<compile_context>
chip_gen: v6e
topology: v6e:2x2x1
jax: 0.10.0
libtpu: 0.0.40
codegen_flags: <defaults>
</compile_context>

<pallas_src>
import jax
import jax.numpy as jnp
from jax.experimental import pallas as pl
from jax.experimental.pallas import tpu as pltpu


def _round_up(x, m):
    return ((x + m - 1) // m) * m


def _make_kernel(embed_dim, compute_dtype):
    E = embed_dim

    def kernel(e_ref, en_ref, w1_ref, b1_ref, w2_ref, b2_ref, o_ref):
        cd = compute_dtype
        # Layer 1: concat fused via split weight slabs; activations arrive f32 from HBM and are
        # cast to the MXU dtype in-kernel (VPU cast is hidden under the MXU). f32 accumulation.
        # NOTE: E is a multiple of 8 here so the second slab slice is sublane-aligned.
        h = jnp.dot(e_ref[...].astype(cd), w1_ref[:E, :].astype(cd),
                    preferred_element_type=jnp.float32)
        h = h + jnp.dot(en_ref[...].astype(cd), w1_ref[E:, :].astype(cd),
                        preferred_element_type=jnp.float32)
        # Epilogue in f32 on the accumulator: bias broadcast [1, H] + ReLU on the VPU.
        h = jnp.maximum(h + b1_ref[...], 0.0)
        # Layer 2: narrow-A output written directly (no lane padding -> minimal HBM writeback).
        o = jnp.dot(h.astype(cd), w2_ref[...].astype(cd), preferred_element_type=jnp.float32)
        o_ref[...] = (o + b2_ref[...]).astype(o_ref.dtype)

    return kernel


def gen_inverse_dynamics(embed, embed_next, params, *, compute_dtype=jnp.bfloat16,
                         allow_xla_fast_path=False):
    """embed, embed_next: [B, embed_dim] float32. Returns [B, action_dim] float32."""
    w1, b1, w2, b2 = params["w1"], params["b1"], params["w2"], params["b2"]
    B, E = embed.shape
    H = w1.shape[1]
    A = w2.shape[1]
    b1 = b1.reshape(1, H).astype(jnp.float32)
    b2 = b2.reshape(1, A).astype(jnp.float32)
    embed = embed.astype(jnp.float32)
    embed_next = embed_next.astype(jnp.float32)

    # Tiny-problem fast path: a fused XLA dot-dot beats any Pallas launch at this size.
    # Off by default so callers (and this demo) exercise the Pallas kernel.
    if allow_xla_fast_path and B <= 256 and H <= 128 and A <= 128:
        x = jnp.concatenate([embed, embed_next], axis=-1)
        h = jnp.maximum(x @ w1 + b1, 0.0)
        return h @ w2 + b2

    # --- batch tiling --------------------------------------------------------------------
    # Big tiles amortize the ~0.35 us per-grid-step overhead; once B > 32 force >= 2 tiles so
    # dimension_semantics=("parallel",) can shard the batch axis across both v7x TensorCores.
    # Tiles are multiples of 16 (bf16 packs two rows per sublane); last block may be ragged.
    if B <= 32:
        TB = B                                           # single full-dim tile (always legal)
    else:
        TB = min(512, _round_up(pl.cdiv(B, 2), 16))      # >= 2 tiles, capped at 512
    n_tiles = pl.cdiv(B, TB)                             # ragged grid; OOB output rows masked

    itemsize = 4  # all HBM-resident operands stay f32
    cost = pl.CostEstimate(
        flops=2 * B * (2 * E * H + H * A),
        transcendentals=0,
        bytes_accessed=(2 * B * E + 2 * E * H + H + H * A + A + B * A) * itemsize,
    )

    kernel = _make_kernel(E, compute_dtype)

    return pl.pallas_call(
        kernel,
        out_shape=jax.ShapeDtypeStruct((B, A), jnp.float32),
        grid_spec=pl.GridSpec(
            grid=(n_tiles,),
            in_specs=[
                pl.BlockSpec((TB, E), lambda i: (i, 0)),      # embed tile (pipelined)
                pl.BlockSpec((TB, E), lambda i: (i, 0)),      # embed_next tile (pipelined)
                pl.BlockSpec((2 * E, H), lambda i: (0, 0)),   # W1 (VMEM-resident, loaded once)
                pl.BlockSpec((1, H), lambda i: (0, 0)),       # b1
                pl.BlockSpec((H, A), lambda i: (0, 0)),       # W2 (VMEM-resident, loaded once)
                pl.BlockSpec((1, A), lambda i: (0, 0)),       # b2
            ],
            out_specs=pl.BlockSpec((TB, A), lambda i: (i, 0)),
        ),
        compiler_params=pltpu.CompilerParams(
            dimension_semantics=("parallel",),   # megacore-shardable batch axis (v7x)
        ),
        cost_estimate=cost,
    )(embed, embed_next, w1, b1, w2, b2)


def init_params(key, embed_dim, hidden_dim, action_dim):
    """Deterministic synthetic parameters (shapes match the PyTorch module, stored [in, out])."""
    k1, k2, k3, k4 = jax.random.split(key, 4)
    in_dim = 2 * embed_dim
    w1 = jax.random.normal(k1, (in_dim, hidden_dim), jnp.float32) * (1.0 / jnp.sqrt(in_dim))
    b1 = jax.random.normal(k2, (1, hidden_dim), jnp.float32) * 0.01
    w2 = jax.random.normal(k3, (hidden_dim, action_dim), jnp.float32) * (1.0 / jnp.sqrt(hidden_dim))
    b2 = jax.random.normal(k4, (1, action_dim), jnp.float32) * 0.01
    return {"w1": w1, "b1": b1, "w2": w2, "b2": b2}


def _reference(embed, embed_next, params):
    x = jnp.concatenate([embed, embed_next], axis=-1)
    h = jnp.maximum(x @ params["w1"] + params["b1"], 0.0)
    return h @ params["w2"] + params["b2"]


if __name__ == "__main__":
    embed_dim, hidden_dim, action_dim = 32, 32, 4
    key = jax.random.PRNGKey(0)
    k_e, k_en, k_p, k_e2, k_en2 = jax.random.split(key, 5)
    params = init_params(k_p, embed_dim, hidden_dim, action_dim)

    # Primary check: small batch, single tile.
    B = 8
    embed = jax.random.normal(k_e, (B, embed_dim), jnp.float32)
    embed_next = jax.random.normal(k_en, (B, embed_dim), jnp.float32)
    out = jax.block_until_ready(gen_inverse_dynamics(embed, embed_next, params))
    ref = _reference(embed, embed_next, params)
    assert out.shape == (B, action_dim)
    # bf16 matmul inputs with f32 accumulation -> loosened tolerance vs f32 reference.
    assert jnp.allclose(out, ref, atol=5e-2, rtol=5e-2), "mismatch vs reference (B=8)"

    # Secondary check: ragged multi-tile path (>= 2 grid steps, masked partial last block).
    B2 = 100
    embed2 = jax.random.normal(k_e2, (B2, embed_dim), jnp.float32)
    embed_next2 = jax.random.normal(k_en2, (B2, embed_dim), jnp.float32)
    out2 = jax.block_until_ready(gen_inverse_dynamics(embed2, embed_next2, params))
    ref2 = _reference(embed2, embed_next2, params)
    assert out2.shape == (B2, action_dim)
    assert jnp.allclose(out2, ref2, atol=5e-2, rtol=5e-2), "mismatch vs reference (B=100)"

    print("KERNEL_OK")
</pallas_src>

<mosaic_0001>
module attributes {stable_mosaic.version = 11 : i64} {
  func.func @kernel(%arg0: i32, %arg1: memref<8x32xf32, #tpu.memory_space<vmem>>, %arg2: memref<8x32xf32, #tpu.memory_space<vmem>>, %arg3: memref<64x32xf32, #tpu.memory_space<vmem>>, %arg4: memref<1x32xf32, #tpu.memory_space<vmem>>, %arg5: memref<32x4xf32, #tpu.memory_space<vmem>>, %arg6: memref<1x4xf32, #tpu.memory_space<vmem>>, %arg7: memref<8x4xf32, #tpu.memory_space<vmem>>) attributes {dimension_semantics = [#tpu.dimension_semantics<parallel>], iteration_bounds = array<i64: 1>, scalar_prefetch = 0 : i64, scratch_operands = 0 : i64, tpu.core_type = #tpu.core_type<tc>, window_params = [{transform_indices = @transform_0, window_bounds = array<i64: 8, 32>}, {transform_indices = @transform_1, window_bounds = array<i64: 8, 32>}, {pipeline_mode = #tpu.pipeline_mode<synchronous>, transform_indices = @transform_2, window_bounds = array<i64: 64, 32>}, {pipeline_mode = #tpu.pipeline_mode<synchronous>, transform_indices = @transform_3, window_bounds = array<i64: 1, 32>}, {pipeline_mode = #tpu.pipeline_mode<synchronous>, transform_indices = @transform_4, window_bounds = array<i64: 32, 4>}, {pipeline_mode = #tpu.pipeline_mode<synchronous>, transform_indices = @transform_5, window_bounds = array<i64: 1, 4>}, {transform_indices = @transform_6, window_bounds = array<i64: 8, 4>}]} {
    %c0 = arith.constant 0 : index
    %c0_0 = arith.constant 0 : index
    %0 = vector.load %arg1[%c0, %c0_0] : memref<8x32xf32, #tpu.memory_space<vmem>>, vector<8x32xf32>
    %1 = arith.truncf %0 : vector<8x32xf32> to vector<8x32xbf16>
    %c0_1 = arith.constant 0 : index
    %c0_2 = arith.constant 0 : index
    %2 = vector.load %arg3[%c0_1, %c0_2] : memref<64x32xf32, #tpu.memory_space<vmem>>, vector<32x32xf32>
    %3 = arith.truncf %2 : vector<32x32xf32> to vector<32x32xbf16>
    %cst = arith.constant dense<0.000000e+00> : vector<8x32xf32>
    %4 = tpu.matmul %1, %3, %cst {dimension_numbers = #tpu.dot_dimension_numbers<[1], [0], [0], [1], [0, 0, 1, 1], [], []>} : vector<8x32xbf16>, vector<32x32xbf16>, vector<8x32xf32> -> vector<8x32xf32>
    %c0_3 = arith.constant 0 : index
    %c0_4 = arith.constant 0 : index
    %5 = vector.load %arg2[%c0_3, %c0_4] : memref<8x32xf32, #tpu.memory_space<vmem>>, vector<8x32xf32>
    %6 = arith.truncf %5 : vector<8x32xf32> to vector<8x32xbf16>
    %c32 = arith.constant 32 : index
    %c0_5 = arith.constant 0 : index
    %7 = vector.load %arg3[%c32, %c0_5] : memref<64x32xf32, #tpu.memory_space<vmem>>, vector<32x32xf32>
    %8 = arith.truncf %7 : vector<32x32xf32> to vector<32x32xbf16>
    %cst_6 = arith.constant dense<0.000000e+00> : vector<8x32xf32>
    %9 = tpu.matmul %6, %8, %cst_6 {dimension_numbers = #tpu.dot_dimension_numbers<[1], [0], [0], [1], [0, 0, 1, 1], [], []>} : vector<8x32xbf16>, vector<32x32xbf16>, vector<8x32xf32> -> vector<8x32xf32>
    %10 = arith.addf %4, %9 : vector<8x32xf32>
    %c0_7 = arith.constant 0 : index
    %c0_8 = arith.constant 0 : index
    %11 = vector.load %arg4[%c0_7, %c0_8] : memref<1x32xf32, #tpu.memory_space<vmem>>, vector<1x32xf32>
    %12 = vector.broadcast %11 : vector<1x32xf32> to vector<8x32xf32>
    %13 = arith.addf %10, %12 : vector<8x32xf32>
    %cst_9 = arith.constant 0.000000e+00 : f32
    %14 = vector.broadcast %cst_9 : f32 to vector<8x32xf32>
    %15 = arith.maximumf %13, %14 : vector<8x32xf32>
    %16 = arith.truncf %15 : vector<8x32xf32> to vector<8x32xbf16>
    %c0_10 = arith.constant 0 : index
    %c0_11 = arith.constant 0 : index
    %17 = vector.load %arg5[%c0_10, %c0_11] : memref<32x4xf32, #tpu.memory_space<vmem>>, vector<32x4xf32>
    %18 = arith.truncf %17 : vector<32x4xf32> to vector<32x4xbf16>
    %cst_12 = arith.constant dense<0.000000e+00> : vector<8x4xf32>
    %19 = tpu.matmul %16, %18, %cst_12 {dimension_numbers = #tpu.dot_dimension_numbers<[1], [0], [0], [1], [0, 0, 1, 1], [], []>} : vector<8x32xbf16>, vector<32x4xbf16>, vector<8x4xf32> -> vector<8x4xf32>
    %c0_13 = arith.constant 0 : index
    %c0_14 = arith.constant 0 : index
    %20 = vector.load %arg6[%c0_13, %c0_14] : memref<1x4xf32, #tpu.memory_space<vmem>>, vector<1x4xf32>
    %21 = vector.broadcast %20 : vector<1x4xf32> to vector<8x4xf32>
    %22 = arith.addf %19, %21 : vector<8x4xf32>
    %c0_15 = arith.constant 0 : index
    %c0_16 = arith.constant 0 : index
    %23 = vector.load %arg7[%c0_15, %c0_16] : memref<8x4xf32, #tpu.memory_space<vmem>>, vector<8x4xf32>
    tpu.vector_store %arg7[%c0_15, %c0_16], %22 {strides = array<i32>} : memref<8x4xf32, #tpu.memory_space<vmem>>, vector<8x4xf32>,
    return
  }
  func.func @transform_0(%arg0: i32) -> (i32, i32) {
    %c0_i32 = arith.constant 0 : i32
    %c0_i32_0 = arith.constant 0 : i32
    return %arg0, %c0_i32 : i32, i32
  }
  func.func @transform_1(%arg0: i32) -> (i32, i32) {
    %c0_i32 = arith.constant 0 : i32
    %c0_i32_0 = arith.constant 0 : i32
    return %arg0, %c0_i32 : i32, i32
  }
  func.func @transform_2(%arg0: i32) -> (i32, i32) {
    %c0_i32 = arith.constant 0 : i32
    %c0_i32_0 = arith.constant 0 : i32
    %c0_i32_1 = arith.constant 0 : i32
    return %c0_i32, %c0_i32_0 : i32, i32
  }
  func.func @transform_3(%arg0: i32) -> (i32, i32) {
    %c0_i32 = arith.constant 0 : i32
    %c0_i32_0 = arith.constant 0 : i32
    %c0_i32_1 = arith.constant 0 : i32
    return %c0_i32, %c0_i32_0 : i32, i32
  }
  func.func @transform_4(%arg0: i32) -> (i32, i32) {
    %c0_i32 = arith.constant 0 : i32
    %c0_i32_0 = arith.constant 0 : i32
    %c0_i32_1 = arith.constant 0 : i32
    return %c0_i32, %c0_i32_0 : i32, i32
  }
  func.func @transform_5(%arg0: i32) -> (i32, i32) {
    %c0_i32 = arith.constant 0 : i32
    %c0_i32_0 = arith.constant 0 : i32
    %c0_i32_1 = arith.constant 0 : i32
    return %c0_i32, %c0_i32_0 : i32, i32
  }
  func.func @transform_6(%arg0: i32) -> (i32, i32) {
    %c0_i32 = arith.constant 0 : i32
    %c0_i32_0 = arith.constant 0 : i32
    return %arg0, %c0_i32 : i32, i32
  }
}

</mosaic_0001>

<bundles_post_ra>
// kernel: tpu_custom_call.1
= control target key start
LH: loop header
LB: loop body
LE: loop exit
PB: predicated region body
PF: predicated region fallthrough
CT: control target
= control target key end

     0   :  { %v239_v0 = vmov 0.0   ;;  %vm240_vm0 = vmmov 0   ;;  %vm40_vm1 = vcmask 261120   ;;  %vm193_vm2 = vcmask 31744   ;;  %s333_s2 = inlined_call_operand.vmem [shape: f32[64,32], index: 2, kind: input, shape index: {}]   ;;  %s334_s1 = inlined_call_operand.vmem [shape: f32[8,32], index: 1, kind: input, shape index: {}]   ;;  %s335_s0 = inlined_call_operand.vmem [shape: f32[8,32], index: 0, kind: input, shape index: {}]   ;;  %s336_s4 = inlined_call_operand.vmem [shape: f32[32,4], index: 4, kind: input, shape index: {}]   ;;  %s337_s3 = inlined_call_operand.vmem [shape: f32[1,32], index: 3, kind: input, shape index: {}]   ;;  %s338_s5 = inlined_call_operand.vmem [shape: f32[1,4], index: 5, kind: input, shape index: {}]   ;;  %s339_s6 = inlined_call_operand.vmem [shape: f32[8,4], index: 6, kind: output, shape index: {}]  }
   0x1   :  { %213 = vmatprep.subr.bf16.mxu0 %v239_v0  ;;  %221 = vmatprep.subr.bf16.mxu1 %v239_v0  ;;  %v36_v1 = vld [vmem:[%s333_s2 + $0x30] sm:$0xff]  ;;  %v37_v2 = vld [vmem:[%s333_s2 + $0x38] sm:$0xff]  ;;  %v34_v6 = vld [vmem:[%s333_s2 + $0x20] sm:$0xff] }
   0x2   :  { %v28_v3 = vld [vmem:[%s333_s2 + $0x10] sm:$0xff]  ;;  %v39_v4 = vpack.c.bf16 %v37_v2, %v36_v1  ;;  %v29_v5 = vld [vmem:[%s333_s2 + $0x18] sm:$0xff]  ;;  %v35_v7 = vld [vmem:[%s333_s2 + $0x28] sm:$0xff]  ;;  %217 = vmatprep.mubr.msk.bf16.mxu0 %vm240_vm0, %v239_v0  ;;  %225 = vmatprep.mubr.msk.bf16.mxu1 %vm240_vm0, %v239_v0 }
   0x3   :  { %v31_v8 = vpack.c.bf16 %v29_v5, %v28_v3  ;;  %v26_v9 = vld [vmem:[%s333_s2] sm:$0xff]  ;;  %v27_v10 = vld [vmem:[%s333_s2 + $0x8] sm:$0xff]  ;;  %v38_v11 = vpack.c.bf16 %v35_v7, %v34_v6  ;;  %v139_v17 = vld [vmem:[%s336_s4 + $0x10] sm:$0xff] }
   0x4   :  { %214 = vmatpush3.bf16.msra.mxu0 %v39_v4  ;;  %v32_v12 = vld [vmem:[%s334_s1] sm:$0xff]  ;;  %v30_v13 = vpack.c.bf16 %v27_v10, %v26_v9  ;;  %v140_v18 = vld [vmem:[%s336_s4 + $0x18] sm:$0xff]  ;;  %v138_v21 = vld [vmem:[%s336_s4 + $0x8] sm:$0xff] }
   0x5   :  { %222 = vmatpush3.bf16.msra.mxu1 %v31_v8  ;;  %215 = vmatprep.subr.bf16.mxu0 %v239_v0  ;;  %v24_v14 = vld [vmem:[%s335_s0] sm:$0xff]  ;;  %v33_v15 = vpack.c.bf16 %v32_v12, %v32_v12  ;;  %v142_v19 = vpack.c.bf16 %v140_v18, %v139_v17 }
   0x6   :  { %223 = vmatprep.subr.bf16.mxu1 %v239_v0  ;;  %v25_v16 = vpack.c.bf16 %v24_v14, %v24_v14  ;;  %v137_v20 = vld [vmem:[%s336_s4] sm:$0xff] }
   0x7   :  { %v141_v22 = vpack.c.bf16 %v138_v21, %v137_v20  ;;  %v201_v25 = vld [vmem:[%s337_s3] ss:$0 sm:$0xff] }
   0x8   :  { %216 = vmatpush3.bf16.msra.mxu0 %v38_v11  ;;  %v202_v36 = vld [vmem:[%s338_s5] ss:$0 sm:$0xff] }
   0x9   :  { %224 = vmatpush3.bf16.msra.mxu1 %v30_v13  ;;  %229 = vmatprep.subr.bf16.mxu0 %v239_v0 }
   0xb   :  { %218 = vmatmul.mubr.msk.bf16.vlgmr.msra.gmra.mxu0 %vm40_vm1, %v33_v15 }
   0xc   :  { %226 = vmatmul.mubr.msk.bf16.vlgmr.msra.gmra.mxu1 %vm40_vm1, %v25_v16  ;;  %233 = vmatprep.mubr.msk.bf16.mxu0 %vm240_vm0, %v239_v0 }
   0xd   :  { %230 = vmatpush3.bf16.msra.mxu0 %v142_v19 }
   0xe   :  { %231 = vmatprep.subr.bf16.mxu0 %v239_v0 }
  0x11   :  { %232 = vmatpush3.bf16.msra.mxu0 %v141_v22 }
  0xcb   :  { %v78_v23 = vpop.f32.mrf.mxu0 }
  0xcc   :  { %v121_v24 = vpop.f32.mrf.mxu1 }
  0xcd   :  { %v122_v26 = vadd.f32 %v121_v24, %v78_v23  ;;  %v219_v27 = vpop.f32.mrf.mxu0 }
  0xce   :  { %v227_v28 = vpop.f32.mrf.mxu1 }
  0xcf   :  { %v134_v29 = vadd.f32 %v201_v25, %v122_v26  ;;  %v81_v30 = vpop.f32.mrf.mxu0 }
  0xd0   :  { %v124_v31 = vpop.f32.mrf.mxu1 }
  0xd1   :  { %v135_v32 = vmax.f32 %v134_v29, 0.0  ;;  %v220_v33 = vpop.f32.mrf.mxu0 }
  0xd2   :  { %v228_v34 = vpop.f32.mrf.mxu1 }
  0xd3   :  { %v136_v35 = vpack.c.bf16 %v135_v32, %v135_v32 }
  0xd5   :  { %234 = vmatmul.mubr.msk.bf16.vlgmr.msra.gmra.mxu0 %vm40_vm1, %v136_v35 }
 0x195   :  { %v187_v37 = vpop.f32.mrf.mxu0 }
 0x196   :  { %v188_v38 = vadd.f32 %v202_v36, %v187_v37 }
 0x197   :  { %v235_v39 = vpop.f32.mrf.mxu0 }
 0x198   :  { %194 = vst.msk [vmem:[%s339_s6] sm:$0xff] %vm193_vm2, %v188_v38 }
 0x199   :  { %v190_v40 = vpop.f32.mrf.mxu0 }
 0x19b   :  { %v236_v41 = vpop.f32.mrf.mxu0 }

</bundles_post_ra>
